<compile_context>
chip_gen: v7x
topology: tpu7x:2x2x1
jax: 0.10.0
libtpu: 0.0.40
codegen_flags: <defaults>
</compile_context>

<pallas_src>
import functools
import math

import jax
import jax.numpy as jnp
from jax import lax
from jax.experimental import pallas as pl
from jax.experimental.pallas import tpu as pltpu

_LANE = 128
_SUBLANE = 8


def _round_up(x, m):
    return ((x + m - 1) // m) * m


def _cdiv(a, b):
    return (a + b - 1) // b


def _chip_config():
    """Generation-gated knobs. v7x: 2 TCs, 64 MiB VMEM/TC -> smaller tiles, core split.
    v5e/v6e: 1 TC, 128 MiB VMEM -> bigger tiles, higher scoped-VMEM limit."""
    kind = ""
    try:
        kind = jax.devices()[0].device_kind.lower()
    except Exception:
        pass
    is_v7x = ("v7" in kind) or ("tpu7" in kind)
    if is_v7x:
        return {"is_v7x": True, "num_tc": 2,
                "tile_bytes": 2 * 1024 * 1024,      # per input per DMA tile (f32-equiv)
                "vmem_limit": 32 * 1024 * 1024}
    return {"is_v7x": False, "num_tc": 1,
            "tile_bytes": 4 * 1024 * 1024,
            "vmem_limit": 64 * 1024 * 1024}


def _fold_to_vreg(x):
    """Fold an (r, c) f32 block to (8, 128) using only lane/sublane-aligned VPU adds
    (~1 add per input vreg). The single cross-lane reduce happens once, in the wrapper."""
    r, c = x.shape
    col = x[:, 0:_LANE]
    for j in range(1, c // _LANE):
        col = col + x[:, j * _LANE:(j + 1) * _LANE]
    out = col[0:_SUBLANE, :]
    for i in range(1, r // _SUBLANE):
        out = out + col[i * _SUBLANE:(i + 1) * _SUBLANE, :]
    return out


def _focal_pow(base, gamma):
    """base ** gamma without the generic exp(log()) path (2 extra EUP ops) for common
    gammas: any half-integer 0 < gamma <= 4 -> sqrt + repeated multiplies."""
    if gamma == 0.0:
        return None                       # modulation factor == 1
    twice = 2.0 * gamma
    if twice == round(twice) and 0 < int(round(twice)) <= 8:
        h = int(round(twice))
        out = jnp.sqrt(base) if (h % 2) else None
        for _ in range(h // 2):
            out = base if out is None else out * base
        return out
    return base ** gamma                  # generic fallback (uncommon gammas only)


def _focal_loss_kernel(x_ref, t_ref, acc_ref, *, gamma, binary_targets,
                       rows, cols, tr, tc, chunk, rtp, ctp, split_rows,
                       need_row_mask, need_col_mask):
    """Elementwise BCE-with-logits + focal modulation, accumulated per partition.

    Grid = (P, inner0, inner1). The (8,128) output block for partition p stays
    resident across the two inner 'arbitrary' axes and is the accumulator."""
    i = pl.program_id(1)
    j = pl.program_id(2)

    @pl.when(jnp.logical_and(i == 0, j == 0))
    def _():
        acc_ref[...] = jnp.zeros_like(acc_ref)

    if split_rows:                            # parallel/core split on the row-tile axis
        row_block = pl.program_id(0) * rtp + i
        col_block = j
    else:                                     # parallel/core split on the col-tile axis
        row_block = i
        col_block = pl.program_id(0) * ctp + j
    row0 = row_block * tr
    col0 = col_block * tc

    n_chunks = tr // chunk

    def one_chunk(c, acc):
        # Process a (chunk, tc) row sub-slab of the DMA'd tile so live f32
        # temporaries stay ~O(chunk x tc) instead of ~O(tile) (bounds VMEM / spills).
        if n_chunks == 1:
            x = x_ref[...]
            t = t_ref[...]
            r_off = 0
        else:
            r_off = pl.multiple_of(c * chunk, chunk)
            x = x_ref[pl.ds(r_off, chunk), :]
            t = t_ref[pl.ds(r_off, chunk), :]
        if x.dtype != jnp.float32:
            x = x.astype(jnp.float32)
        if t.dtype != jnp.float32:
            t = t.astype(jnp.float32)

        # BCEWithLogitsLoss, reduction='none' (numerically stable form).
        p = jnp.exp(-jnp.abs(x))                                  # EUP exp (reused below)
        bce = jnp.maximum(x, 0.0) - x * t + jnp.log1p(p)

        if binary_targets:
            # Hard {0,1} labels: exp(-bce) = q / (1 + p), q = p where sign(x)
            # disagrees with t else 1 -> replaces one exp with a select + approx vrcp.
            q = jnp.where(jnp.logical_xor(x >= 0.0, t >= 0.5), p, 1.0)
            exp_neg_bce = q * pl.reciprocal(1.0 + p, approx=True)
        else:
            exp_neg_bce = jnp.exp(-bce)
        base = 1.000001 - exp_neg_bce

        mod = _focal_pow(base, gamma)
        focal = bce if mod is None else bce * mod

        # Zero the padded tail of ragged tiles before folding (compiled out when the
        # shape divides the tile exactly).
        if need_row_mask or need_col_mask:
            mask = None
            if need_row_mask:
                rid = row0 + r_off + lax.broadcasted_iota(jnp.int32, focal.shape, 0)
                mask = rid < rows
            if need_col_mask:
                cid = col0 + lax.broadcasted_iota(jnp.int32, focal.shape, 1)
                cmask = cid < cols
                mask = cmask if mask is None else jnp.logical_and(mask, cmask)
            focal = jnp.where(mask, focal, 0.0)

        return acc + _fold_to_vreg(focal)

    zero = jnp.zeros((_SUBLANE, _LANE), jnp.float32)
    if n_chunks == 1:
        acc_ref[...] += one_chunk(0, zero)
    else:
        acc_ref[...] += lax.fori_loop(0, n_chunks, one_chunk, zero, unroll=True)


def _even_split(dim, tile, unit):
    """Largest t <= tile, multiple of `unit`, such that cdiv(dim, t) is even; else None."""
    t = (tile // unit) * unit
    while t >= unit:
        if _cdiv(dim, t) % 2 == 0:
            return t
        t -= unit
    return None


def focal_loss(inputs, target, *, gamma=0.5, alpha=1.0, reduction="mean",
               binary_targets=False):
    """Focal loss around BCE-with-logits. inputs/target: same-shape (>=2D) arrays.

    binary_targets=True enables the EUP-saving hard-label fast path (uses an
    approximate reciprocal; only exact for {0,1} targets). Keep False for soft labels.
    """
    assert inputs.shape == target.shape and inputs.ndim >= 2
    shape = inputs.shape
    n = math.prod(shape)
    if inputs.ndim == 2:
        rows, cols = shape
    else:
        cols = shape[-1] * shape[-2]          # H*W on the lane axis
        rows = n // cols                      # B*C(*...) on the sublane axis
    x2 = inputs.reshape(rows, cols)
    t2 = target.reshape(rows, cols)

    if reduction == "mean":
        divisor = float(n)
    elif reduction == "sum":
        divisor = 1.0
    else:
        # TODO(synk): reduction='none' (per-element loss output) not wired up here.
        raise NotImplementedError("only 'mean' and 'sum' reductions implemented")

    cfg = _chip_config()
    itemsize = jnp.dtype(inputs.dtype).itemsize
    # dtype-aware sublane packing: f32 -> 8 rows, bf16/f16 -> 16, int8/fp8 -> 32.
    sub = _SUBLANE * max(1, 4 // max(1, itemsize))

    # --- tile selection -------------------------------------------------------
    # Lane dim: as wide as possible up to 2048 (lane-dense DMA); ragged edges are
    # masked in-kernel, so no divisibility requirement on H*W or B*C.
    tc = min(_round_up(cols, _LANE), 2048)
    # Rows per inner sub-chunk: ~512 KiB of f32 temporaries, multiple of `sub`.
    chunk = max(sub, min(512, ((128 * 1024) // tc) // sub * sub))
    rows_pad = _round_up(rows, sub)
    tile_elems = cfg["tile_bytes"] // 4       # f32-equivalent elements per DMA tile
    if rows_pad <= chunk:
        chunk = rows_pad
        tr = rows_pad
    else:
        n_chunks = max(1, min(8, tile_elems // (tc * chunk), _cdiv(rows_pad, chunk)))
        tr = chunk * n_chunks

    # --- v7x: guarantee both TensorCores get half the grid ----------------------
    P = 1
    split_rows = True
    if cfg["num_tc"] >= 2:
        tr2 = _even_split(rows, tr, chunk)
        tc2 = _even_split(cols, tc, _LANE)

        def padded_vol(trr, tcc):
            return _cdiv(rows, trr) * trr * _cdiv(cols, tcc) * tcc

        best = None
        if tr2 is not None:
            best = ("rows", padded_vol(tr2, tc))
        if tc2 is not None and (best is None or padded_vol(tr, tc2) < best[1]):
            best = ("cols", padded_vol(tr, tc2))
        if best is not None:
            P = 2
            if best[0] == "rows":
                tr, split_rows = tr2, True
            else:
                tc, split_rows = tc2, False

    row_tiles = _cdiv(rows, tr)
    col_tiles = _cdiv(cols, tc)
    need_row_mask = (rows % tr) != 0
    need_col_mask = (cols % tc) != 0

    if split_rows:
        rtp = row_tiles // P
        ctp = col_tiles
        grid = (P, rtp, col_tiles)
        in_map = lambda p, i, j: (p * rtp + i, j)
    else:
        rtp = row_tiles
        ctp = col_tiles // P
        grid = (P, row_tiles, ctp)
        in_map = lambda p, i, j: (i, p * ctp + j)

    if cfg["is_v7x"] and P == 2:
        # CORE_PARALLEL is the semantics that actually splits the leading axis
        # across the two v7x TensorCores.
        sem0 = getattr(pltpu, "CORE_PARALLEL", "parallel")
    else:
        sem0 = "parallel"
    dim_sem = (sem0, "arbitrary", "arbitrary")

    kernel = functools.partial(
        _focal_loss_kernel, gamma=gamma, binary_targets=bool(binary_targets),
        rows=rows, cols=cols, tr=tr, tc=tc, chunk=chunk, rtp=rtp, ctp=ctp,
        split_rows=split_rows, need_row_mask=need_row_mask,
        need_col_mask=need_col_mask)

    cost = pl.CostEstimate(
        flops=12 * n,
        transcendentals=4 * n,
        bytes_accessed=(x2.size * x2.dtype.itemsize
                        + t2.size * t2.dtype.itemsize
                        + P * _SUBLANE * _LANE * 4),
    )

    # Note: if an xprof trace on v7x shows exposed DMA after the EUP chain, add
    # pipeline_mode=pl.Buffered(3) to the two input BlockSpecs below.
    partials = pl.pallas_call(
        kernel,
        out_shape=jax.ShapeDtypeStruct((P, _SUBLANE, _LANE), jnp.float32),
        grid_spec=pltpu.PrefetchScalarGridSpec(
            num_scalar_prefetch=0,
            grid=grid,
            in_specs=[pl.BlockSpec((tr, tc), in_map),
                      pl.BlockSpec((tr, tc), in_map)],
            out_specs=pl.BlockSpec((None, _SUBLANE, _LANE),
                                   lambda p, i, j: (p, 0, 0)),
        ),
        compiler_params=pltpu.CompilerParams(
            dimension_semantics=dim_sem,
            vmem_limit_bytes=cfg["vmem_limit"],
        ),
        cost_estimate=cost,
    )(x2, t2)

    # Single cross-lane reduce; fold alpha and the mean divisor into one final scale.
    return jnp.sum(partials) * (float(alpha) / divisor)


def _focal_loss_ref(inputs, target, *, gamma=0.5, alpha=1.0, reduction="mean"):
    x = inputs.astype(jnp.float32)
    t = target.astype(jnp.float32)
    bce = jnp.maximum(x, 0.0) - x * t + jnp.log1p(jnp.exp(-jnp.abs(x)))
    loss = bce * (alpha * (1.000001 - jnp.exp(-bce)) ** gamma)
    return loss.mean() if reduction == "mean" else loss.sum()


if __name__ == "__main__":
    key = jax.random.PRNGKey(0)
    k_x, k_t = jax.random.split(key)

    # 1) Primary small shape (single-tile path).
    B, C, H, W = 2, 4, 16, 16
    logits = jax.random.normal(k_x, (B, C, H, W), dtype=jnp.float32)
    target = jax.random.bernoulli(k_t, 0.5, (B, C, H, W)).astype(jnp.float32)
    out = jax.block_until_ready(focal_loss(logits, target, gamma=0.5, alpha=1.0))
    ref = _focal_loss_ref(logits, target, gamma=0.5, alpha=1.0)
    assert jnp.allclose(out, ref, rtol=1e-5, atol=1e-6), (out, ref)

    # 2) Multi-tile accumulation across the column (reduction) axis.
    l2 = jax.random.normal(k_x, (2, 4, 64, 64), dtype=jnp.float32)
    t2 = jax.random.bernoulli(k_t, 0.5, (2, 4, 64, 64)).astype(jnp.float32)
    out2 = jax.block_until_ready(focal_loss(l2, t2, gamma=0.5, alpha=1.0))
    ref2 = _focal_loss_ref(l2, t2, gamma=0.5, alpha=1.0)
    assert jnp.allclose(out2, ref2, rtol=1e-5, atol=1e-6), (out2, ref2)

    # 3) Ragged shape (H=W=7) -> masked tail tile, gamma=2, alpha=0.25, 'sum'.
    l3 = jax.random.normal(k_x, (2, 3, 7, 7), dtype=jnp.float32)
    t3 = jax.random.bernoulli(k_t, 0.5, (2, 3, 7, 7)).astype(jnp.float32)
    out3 = jax.block_until_ready(
        focal_loss(l3, t3, gamma=2.0, alpha=0.25, reduction="sum"))
    ref3 = _focal_loss_ref(l3, t3, gamma=2.0, alpha=0.25, reduction="sum")
    assert jnp.allclose(out3, ref3, rtol=1e-5, atol=1e-5), (out3, ref3)

    # 4) Multi-chunk inner fori_loop (rows > sub-chunk) with a masked row tail.
    l4 = jax.random.normal(k_x, (2, 40, 32, 64), dtype=jnp.float32)
    t4 = jax.random.bernoulli(k_t, 0.5, (2, 40, 32, 64)).astype(jnp.float32)
    out4 = jax.block_until_ready(focal_loss(l4, t4, gamma=1.5, alpha=1.0))
    ref4 = _focal_loss_ref(l4, t4, gamma=1.5, alpha=1.0)
    assert jnp.allclose(out4, ref4, rtol=1e-5, atol=1e-6), (out4, ref4)

    # 5) bf16 inputs (16-row sublane packing path, no wrapper-side upcast).
    l5 = jax.random.normal(k_x, (2, 8, 16, 16), dtype=jnp.bfloat16)
    t5 = jax.random.bernoulli(k_t, 0.5, (2, 8, 16, 16)).astype(jnp.bfloat16)
    out5 = jax.block_until_ready(focal_loss(l5, t5, gamma=0.5, alpha=1.0))
    ref5 = _focal_loss_ref(l5, t5, gamma=0.5, alpha=1.0)
    assert jnp.allclose(out5, ref5, rtol=1e-4, atol=1e-5), (out5, ref5)

    # 6) Hard-label fast path (one fewer exp/element; uses approx reciprocal).
    out6 = jax.block_until_ready(
        focal_loss(logits, target, gamma=0.5, alpha=1.0, binary_targets=True))
    assert jnp.allclose(out6, ref, rtol=2e-2, atol=1e-3), (out6, ref)

    print("KERNEL_OK")
</pallas_src>

<mosaic_0001>
module attributes {stable_mosaic.version = 11 : i64} {
  func.func @_focal_loss_kernel(%arg0: i32, %arg1: i32, %arg2: i32, %arg3: memref<8x256xf32, #tpu.memory_space<vmem>>, %arg4: memref<8x256xf32, #tpu.memory_space<vmem>>, %arg5: memref<1x8x128xf32, #tpu.memory_space<vmem>>) attributes {dimension_semantics = [#tpu.dimension_semantics<parallel>, #tpu.dimension_semantics<arbitrary>, #tpu.dimension_semantics<arbitrary>], iteration_bounds = array<i64: 1, 1, 1>, scalar_prefetch = 0 : i64, scratch_operands = 0 : i64, tpu.core_type = #tpu.core_type<tc>, window_params = [{transform_indices = @transform_0, window_bounds = array<i64: 8, 256>}, {transform_indices = @transform_1, window_bounds = array<i64: 8, 256>}, {transform_indices = @transform_2, window_bounds = array<i64: 1, 8, 128>}]} {
    %c0_i32 = arith.constant 0 : i32
    %0 = arith.cmpi eq, %arg1, %c0_i32 : i32
    %c0_i32_0 = arith.constant 0 : i32
    %1 = arith.cmpi eq, %arg2, %c0_i32_0 : i32
    %2 = arith.andi %0, %1 : i1
    %3 = arith.extui %2 : i1 to i32
    %c0_i32_1 = arith.constant 0 : i32
    %4 = arith.cmpi ne, %3, %c0_i32_1 : i32
    scf.if %4 {
      %cst_15 = arith.constant 0.000000e+00 : f32
      %35 = vector.broadcast %cst_15 : f32 to vector<8x128xf32>
      %c0_16 = arith.constant 0 : index
      %c0_17 = arith.constant 0 : index
      %c0_18 = arith.constant 0 : index
      %36 = vector.load %arg5[%c0_16, %c0_17, %c0_18] : memref<1x8x128xf32, #tpu.memory_space<vmem>>, vector<1x8x128xf32>
      %37 = vector.shape_cast %36 : vector<1x8x128xf32> to vector<8x128xf32>
      %38 = vector.shape_cast %35 : vector<8x128xf32> to vector<1x8x128xf32>
      tpu.vector_store %arg5[%c0_16, %c0_17, %c0_18], %38 {strides = array<i32>} : memref<1x8x128xf32, #tpu.memory_space<vmem>>, vector<1x8x128xf32>,
    } else {
    }
    %cst = arith.constant 0.000000e+00 : f32
    %5 = vector.broadcast %cst : f32 to vector<8x128xf32>
    %c0 = arith.constant 0 : index
    %c0_2 = arith.constant 0 : index
    %c0_3 = arith.constant 0 : index
    %6 = vector.load %arg5[%c0, %c0_2, %c0_3] : memref<1x8x128xf32, #tpu.memory_space<vmem>>, vector<1x8x128xf32>
    %7 = vector.shape_cast %6 : vector<1x8x128xf32> to vector<8x128xf32>
    %c0_4 = arith.constant 0 : index
    %c0_5 = arith.constant 0 : index
    %8 = vector.load %arg3[%c0_4, %c0_5] : memref<8x256xf32, #tpu.memory_space<vmem>>, vector<8x256xf32>
    %c0_6 = arith.constant 0 : index
    %c0_7 = arith.constant 0 : index
    %9 = vector.load %arg4[%c0_6, %c0_7] : memref<8x256xf32, #tpu.memory_space<vmem>>, vector<8x256xf32>
    %10 = math.absf %8 : vector<8x256xf32>
    %cst_8 = arith.constant 0.000000e+00 : f32
    %11 = vector.broadcast %cst_8 : f32 to vector<8x256xf32>
    %12 = arith.subf %11, %10 : vector<8x256xf32>
    %13 = math.exp %12 : vector<8x256xf32>
    %cst_9 = arith.constant 0.000000e+00 : f32
    %14 = vector.broadcast %cst_9 : f32 to vector<8x256xf32>
    %15 = arith.maximumf %8, %14 : vector<8x256xf32>
    %16 = arith.mulf %8, %9 : vector<8x256xf32>
    %17 = arith.subf %15, %16 : vector<8x256xf32>
    %18 = math.log1p %13 : vector<8x256xf32>
    %19 = arith.addf %17, %18 : vector<8x256xf32>
    %cst_10 = arith.constant 0.000000e+00 : f32
    %20 = vector.broadcast %cst_10 : f32 to vector<8x256xf32>
    %21 = arith.subf %20, %19 : vector<8x256xf32>
    %22 = math.exp %21 : vector<8x256xf32>
    %cst_11 = arith.constant 1.00000095 : f32
    %23 = vector.broadcast %cst_11 : f32 to vector<8x256xf32>
    %24 = arith.subf %23, %22 : vector<8x256xf32>
    %25 = math.sqrt %24 : vector<8x256xf32>
    %26 = arith.mulf %19, %25 : vector<8x256xf32>
    %27 = vector.extract_strided_slice %26 {offsets = [0, 0], sizes = [8, 128], strides = [1, 1]} : vector<8x256xf32> to vector<8x128xf32>
    %28 = vector.extract_strided_slice %26 {offsets = [0, 128], sizes = [8, 128], strides = [1, 1]} : vector<8x256xf32> to vector<8x128xf32>
    %29 = arith.addf %27, %28 : vector<8x128xf32>
    %30 = arith.addf %5, %29 : vector<8x128xf32>
    %31 = arith.addf %7, %30 : vector<8x128xf32>
    %c0_12 = arith.constant 0 : index
    %c0_13 = arith.constant 0 : index
    %c0_14 = arith.constant 0 : index
    %32 = vector.load %arg5[%c0_12, %c0_13, %c0_14] : memref<1x8x128xf32, #tpu.memory_space<vmem>>, vector<1x8x128xf32>
    %33 = vector.shape_cast %32 : vector<1x8x128xf32> to vector<8x128xf32>
    %34 = vector.shape_cast %31 : vector<8x128xf32> to vector<1x8x128xf32>
    tpu.vector_store %arg5[%c0_12, %c0_13, %c0_14], %34 {strides = array<i32>} : memref<1x8x128xf32, #tpu.memory_space<vmem>>, vector<1x8x128xf32>,
    return
  }
  func.func @transform_0(%arg0: i32, %arg1: i32, %arg2: i32) -> (i32, i32) {
    %c1_i32 = arith.constant 1 : i32
    %0 = arith.muli %arg0, %c1_i32 : i32
    %1 = arith.addi %0, %arg1 : i32
    %c0_i32 = arith.constant 0 : i32
    return %1, %arg2 : i32, i32
  }
  func.func @transform_1(%arg0: i32, %arg1: i32, %arg2: i32) -> (i32, i32) {
    %c1_i32 = arith.constant 1 : i32
    %0 = arith.muli %arg0, %c1_i32 : i32
    %1 = arith.addi %0, %arg1 : i32
    %c0_i32 = arith.constant 0 : i32
    return %1, %arg2 : i32, i32
  }
  func.func @transform_2(%arg0: i32, %arg1: i32, %arg2: i32) -> (i32, i32, i32) {
    %c0_i32 = arith.constant 0 : i32
    %c0_i32_0 = arith.constant 0 : i32
    %c0_i32_1 = arith.constant 0 : i32
    return %arg0, %c0_i32, %c0_i32_0 : i32, i32, i32
  }
}

</mosaic_0001>

<bundles_post_ra>
// kernel: tpu_custom_call.1
= control target key start
LH: loop header
LB: loop body
LE: loop exit
PB: predicated region body
PF: predicated region fallthrough
CT: control target
= control target key end

     0   :  { %7 = vsyncpa [#allocation3], 0  ;;  %s282_s0 = inlined_call_operand.hbm [shape: f32[8,256], index: 0, kind: input, shape index: {}]   ;;  %s283_s1 = inlined_call_operand.hbm [shape: f32[8,256], index: 1, kind: input, shape index: {}]   ;;  %s284_s2 = inlined_call_operand.hbm [shape: f32[1,8,128], index: 2, kind: output, shape index: {}]  }
   0x1   :  { %8 = vsyncpa [#allocation6], 0 }
   0x2   :  { %9 = vsyncpa [#allocation4], 0  ;;  %s228_s9 = smov [#allocation2]   ;;  %s229_s11 = smov [#allocation5]  }
   0x3   :  { %s20_s10 = sshll.u32 %s228_s9, 4  ;;  %s34_s12 = sshll.u32 %s229_s11, 4  ;;  %s21_s10 = int_to_ptr.vmem [resolvable:$true] %s20_s10  ;;  %s35_s12 = int_to_ptr.vmem [resolvable:$true] %s34_s12 }
   0x4   :  { %s156_s15 = scalar_lea.hbm %s282_s0, 256 }
   0x5   :  { %p157_p0 = scmp.ne.s32.totalorder %s282_s0, %s156_s15  ;;  %p160_p1 = scmp.lt.u32.totalorder %s156_s15, %s282_s0 }
   0x7   :  { %p162_p2 = pnand %p160_p1, %p157_p0 }
   0x9   :  { %165 = shalt.err (!%p162_p2)
}
   0xa   :  { %s166_s20 = scalar_lea.vmem %s21_s10, 256  ;;  %p171_p4 = scmp.lt.s32.totalorder %s21_s10, %s21_s10 }
   0xb   :  { %p167_p3 = scmp.ne.s32.totalorder %s21_s10, %s166_s20  ;;  %p172_p5 = scmp.lt.s32.totalorder %s166_s20, %s166_s20 }
   0xd   :  { %p173_p6 = por %p172_p5, %p171_p4 }
   0xf   :  { %p174_p7 = pnand %p173_p6, %p167_p3 }
  0x11   :  { %177 = shalt.err (!%p174_p7)
}
  0x12   :  { %23 = dma.hbm_to_vmem [thread:$0]  %s282_s0, 256, %s21_s10, [#allocation3]  }
  0x13   :  { %s178_s25 = scalar_lea.hbm %s283_s1, 256 }
  0x14   :  { %p179_p8 = scmp.ne.s32.totalorder %s283_s1, %s178_s25  ;;  %p182_p9 = scmp.lt.u32.totalorder %s178_s25, %s283_s1 }
  0x16   :  { %p184_p10 = pnand %p182_p9, %p179_p8 }
  0x18   :  { %187 = shalt.err (!%p184_p10)
}
  0x19   :  { %s188_s30 = scalar_lea.vmem %s35_s12, 256  ;;  %p193_p12 = scmp.lt.s32.totalorder %s35_s12, %s35_s12 }
  0x1a   :  { %p189_p11 = scmp.ne.s32.totalorder %s35_s12, %s188_s30  ;;  %p194_p13 = scmp.lt.s32.totalorder %s188_s30, %s188_s30 }
  0x1c   :  { %p195_p0 = por %p194_p13, %p193_p12 }
  0x1e   :  { %p196_p1 = pnand %p195_p0, %p189_p11 }
  0x20   :  { %199 = shalt.err (!%p196_p1)
}
  0x21   :  { %37 = dma.hbm_to_vmem [thread:$0]  %s283_s1, 256, %s35_s12, [#allocation6]  }
  0x22   :  { %222 = dma.done.wait [#allocation3], 256  }
  0x23   :  { %223 = vsyncadd [#allocation3], 4294967040 }
  0x24   :  { %224 = dma.done.wait [#allocation6], 256  }
  0x25   :  { %225 = vsyncadd [#allocation6], 4294967040  ;;  %v54_v0 = vld [vmem:[#allocation2] sm:$0xff]  ;;  %v55_v1 = vld [vmem:[#allocation2 + $0x8] sm:$0xff]  ;;  %s230_s1 = smov [#allocation7]  }
  0x26   :  { %v58_v2 = vand.u32 2147483647, %v54_v0  ;;  %v59_v3 = vand.u32 2147483647, %v55_v1  ;;  %v56_v14 = vld [vmem:[#allocation5] sm:$0xff]  ;;  %v57_v15 = vld [vmem:[#allocation5 + $0x8] sm:$0xff] }
  0x27   :  { %v66_v17 = vmax.f32 %v54_v0, 0.0  ;;  %v68_v18 = vmul.f32 %v56_v14, %v54_v0  ;;  %v67_v21 = vmax.f32 %v55_v1, 0.0  ;;  %v69_v22 = vmul.f32 %v57_v15, %v55_v1  ;;  %s126_s4 = sshll.u32 %s230_s1, 4  ;;  %s127_s4 = int_to_ptr.vmem [resolvable:$true] %s126_s4 }
  0x28   :  { %v60_v4 = vsub.f32 0.0, %v58_v2  ;;  %v61_v5 = vsub.f32 0.0, %v59_v3  ;;  %s200_s5 = scalar_lea.vmem %s127_s4, 128  ;;  %p205_p3 = scmp.lt.s32.totalorder %s127_s4, %s127_s4 }
  0x29   :  { %v70_v26 = vsub.f32 %v66_v17, %v68_v18  ;;  %v71_v29 = vsub.f32 %v67_v21, %v69_v22  ;;  %p201_p2 = scmp.ne.s32.totalorder %s127_s4, %s200_s5  ;;  %p206_p4 = scmp.lt.s32.totalorder %s200_s5, %s200_s5 }
  0x2a   :  { %v62_v6 = vmul.f32 1.442695, %v60_v4  ;;  %v64_v7 = vmul.f32 1.442695, %v61_v5 }
  0x2b   :  { %p207_p5 = por %p206_p4, %p205_p3 }
  0x2c   :  { %140 = vpow2.f32 %v62_v6 }
  0x2d   :  { %142 = vpow2.f32 %v64_v7  ;;  %p208_p6 = pnand %p207_p5, %p201_p2 }
  0x36   :  { %v141_v8 = vpop.eup %140 }
  0x37   :  { %v143_v9 = vpop.eup %142  ;;  %v72_v10 = vadd.f32 1.0, %v141_v8  ;;  %v75_v12 = vmul.f32 -0.5, %v141_v8  ;;  %v78_v19 = vand.u32 2147483647, %v141_v8 }
  0x38   :  { %v81_v11 = vadd.f32 1.0, %v143_v9  ;;  %v84_v13 = vmul.f32 -0.5, %v143_v9  ;;  %v87_v23 = vand.u32 2147483647, %v143_v9 }
  0x39   :  { %144 = vlog2.f32 %v72_v10  ;;  %v76_v16 = vadd.f32 1.0, %v75_v12  ;;  %vm79_vm0 = vcmp.lt.f32.partialorder %v78_v19, 0.0004427343 }
  0x3a   :  { %146 = vlog2.f32 %v81_v11  ;;  %v85_v20 = vadd.f32 1.0, %v84_v13  ;;  %vm88_vm1 = vcmp.lt.f32.partialorder %v87_v23, 0.0004427343 }
  0x3b   :  { %v77_v24 = vmul.f32 %v141_v8, %v76_v16 }
  0x3c   :  { %v86_v27 = vmul.f32 %v143_v9, %v85_v20 }
  0x43   :  { %v145_v25 = vpop.eup %144 }
  0x44   :  { %v147_v28 = vpop.eup %146  ;;  %v74_v30 = vmul.f32 0.6931472, %v145_v25 }
  0x45   :  { %v83_v31 = vmul.f32 0.6931472, %v147_v28 }
  0x46   :  { %v80_v32 = vsel %vm79_vm0, %v77_v24, %v74_v30 }
  0x47   :  { %v89_v33 = vsel %vm88_vm1, %v86_v27, %v83_v31  ;;  %v90_v34 = vadd.f32 %v80_v32, %v70_v26 }
  0x48   :  { %v91_v35 = vadd.f32 %v89_v33, %v71_v29 }
  0x49   :  { %v92_v36 = vsub.f32 0.0, %v90_v34 }
  0x4a   :  { %v93_v37 = vsub.f32 0.0, %v91_v35 }
  0x4b   :  { %v94_v38 = vmul.f32 1.442695, %v92_v36 }
  0x4c   :  { %v96_v39 = vmul.f32 1.442695, %v93_v37 }
  0x4d   :  { %148 = vpow2.f32 %v94_v38 }
  0x4e   :  { %150 = vpow2.f32 %v96_v39 }
  0x57   :  { %v149_v40 = vpop.eup %148 }
  0x58   :  { %v151_v41 = vpop.eup %150  ;;  %v98_v42 = vsub.f32 1.000001, %v149_v40 }
  0x59   :  { %v99_v43 = vsub.f32 1.000001, %v151_v41 }
  0x5a   :  { %152 = vrsqrt.f32 %v98_v42  ;;  %vm102_vm2 = vcmp.eq.f32.partialorder %v98_v42, inf  ;;  %v105_v45 = vand.u32 2147483648, %v98_v42  ;;  %vm104_vm3 = vcmp.eq.f32.partialorder %v98_v42, 0.0 }
  0x5b   :  { %154 = vrsqrt.f32 %v99_v43  ;;  %vm109_vm4 = vcmp.eq.f32.partialorder %v99_v43, inf  ;;  %v112_v48 = vand.u32 2147483648, %v99_v43  ;;  %vm111_vm5 = vcmp.eq.f32.partialorder %v99_v43, 0.0 }
  0x64   :  { %v153_v44 = vpop.eup %152 }
  0x65   :  { %v155_v46 = vpop.eup %154  ;;  %v101_v47 = vmul.f32 %v153_v44, %v98_v42 }
  0x66   :  { %v108_v49 = vmul.f32 %v155_v46, %v99_v43 }
  0x67   :  { %v103_v50 = vsel %vm102_vm2, %v98_v42, %v101_v47 }
  0x68   :  { %v106_v51 = vsel %vm104_vm3, %v105_v45, %v103_v50  ;;  %v110_v52 = vsel %vm109_vm4, %v99_v43, %v108_v49 }
  0x69   :  { %v113_v53 = vsel %vm111_vm5, %v112_v48, %v110_v52  ;;  %v114_v54 = vmul.f32 %v106_v51, %v90_v34 }
  0x6a   :  { %v115_v55 = vmul.f32 %v113_v53, %v91_v35 }
  0x6c   :  { %v116_v56 = vadd.f32 %v115_v55, %v114_v54 }
  0x6e   :  { %119 = vst [vmem:[#allocation7] sm:$0xff] %v116_v56 }
  0x6f   :  { %211 = shalt.err (!%p208_p6)
}
  0x70   :  { %s212_s8 = scalar_lea.hbm %s284_s2, 128 }
  0x71   :  { %p213_p7 = scmp.ne.s32.totalorder %s284_s2, %s212_s8  ;;  %p216_p8 = scmp.lt.u32.totalorder %s212_s8, %s284_s2 }
  0x73   :  { %p218_p9 = pnand %p216_p8, %p213_p7 }
  0x75   :  { %221 = shalt.err (!%p218_p9)
}
  0x76   :  { %129 = dma.vmem_to_hbm [thread:$0]  %s127_s4, 128, %s284_s2, [#allocation4]  }
  0x77   :  { %226 = dma.done.wait [#allocation4], 128  }
  0x78   :  { %227 = vsyncadd [#allocation4], 4294967168 }
  0x79   :  { %133 = vsyncpa [#allocation3], 1 }
  0x7a   :  { %134 = vsyncpa [#allocation6], 1 }
  0x7b   :  { %135 = vsyncpa [#allocation4], 1 }

</bundles_post_ra>
